<compile_context>
chip_gen: v5e
topology: v5e:2x2
jax: 0.10.0
libtpu: 0.0.40
codegen_flags: <defaults>
</compile_context>

<pallas_src>
import jax
import jax.numpy as jnp
from jax import lax
from jax.experimental import pallas as pl
from jax.experimental.pallas import tpu as pltpu


def _round_up(n, m):
    return ((n + m - 1) // m) * m


def dnn_kernel(x_ref, w1_ref, b1_ref, w2_ref, w3_ref, o_ref):
    # In-kernel cast of the streamed f32 tile (VPU op, hidden under matmuls).
    x = x_ref[...].astype(jnp.bfloat16)

    # Layer 1: Linear(D, 150->256 padded) + ReLU.  b1 lane 255 == 1, so h1's
    # lane 255 is exactly 1 after ReLU (constant lane used to fold b2/b3).
    h1 = jnp.dot(x, w1_ref[...], preferred_element_type=jnp.float32)
    h1 = jnp.maximum(h1 + b1_ref[...], 0.0).astype(jnp.bfloat16)

    # Layer 2: Linear(150, 50->128 padded) + ReLU.  Bias b2 is folded into
    # w2 row 255; w2[255,127] == 1 makes h2 lane 127 a constant 1.
    h2 = jnp.dot(h1, w2_ref[...], preferred_element_type=jnp.float32)
    h2 = jnp.maximum(h2, 0.0).astype(jnp.bfloat16)

    # Layer 3: Linear(50, 1) + Sigmoid, computed as w3_row . h2^T so the result
    # is lane-major:  out[m, j] = sum_k w3[m, k] * h2[j, k].  Bias b3 is folded
    # into w3[0, 127] (multiplies h2's constant-1 lane).  Only row 0 is real.
    h3 = lax.dot_general(
        w3_ref[...], h2,
        dimension_numbers=(((1,), (1,)), ((), ())),
        preferred_element_type=jnp.float32,
    )                                               # (16, tb)
    o_ref[...] = jax.nn.sigmoid(h3[0:1, :]).astype(o_ref.dtype)


def dnn_forward(x, padded_params, *, block_rows=2048):
    """x: (B, D) float32 array.  padded_params: output of prepare_params()."""
    B, D = x.shape
    w1, b1 = padded_params["w1"], padded_params["b1"]
    w2, w3 = padded_params["w2"], padded_params["w3"]

    # Batch tile: multiple of 128 (lane-dense output stores), capped at
    # block_rows (VMEM-safe on v5e's 16 MiB scoped default; raise
    # vmem_limit_bytes before exceeding ~4096 on v7x), and capped at
    # ceil(B/4) so moderate batches still yield >=4 grid steps (v7x megacore).
    tb = _round_up(-(-B // 4), 128)
    tb = max(128, min(tb, _round_up(block_rows, 128)))
    grid = (pl.cdiv(B, tb),)

    # Weights/biases: whole-array blocks with constant index maps -> resident.
    const = lambda a: pl.BlockSpec(a.shape, lambda i: (0, 0))

    out = pl.pallas_call(
        dnn_kernel,
        out_shape=jax.ShapeDtypeStruct((1, B), jnp.float32),
        grid=grid,
        in_specs=[
            pl.BlockSpec((tb, D), lambda i: (i, 0)),   # x: streamed per batch tile
            const(w1), const(b1),
            const(w2),
            const(w3),
        ],
        out_specs=pl.BlockSpec((1, tb), lambda i: (0, i)),  # lane-dense output row
        compiler_params=pltpu.CompilerParams(
            dimension_semantics=("parallel",)),             # v7x: shard over 2 TCs
    )(x, w1, b1, w2, w3)

    return out[0, :].reshape(B, 1)


def init_params(key, input_space):
    """Deterministic init matching nn.Linear defaults; weights stored (in, out)."""
    dims = [(input_space, 150), (150, 50), (50, 1)]
    params = {}
    for i, (fan_in, fan_out) in enumerate(dims, start=1):
        key, kw, kb = jax.random.split(key, 3)
        bound = 1.0 / jnp.sqrt(float(fan_in))  # torch default uniform init bound
        params[f"w{i}"] = jax.random.uniform(
            kw, (fan_in, fan_out), jnp.float32, -bound, bound)
        params[f"b{i}"] = jax.random.uniform(
            kb, (1, fan_out), jnp.float32, -bound, bound)
    return params


def prepare_params(params):
    """Zero-pad lane dims to 128 multiples, cast to bf16, and fold b2/b3 into
    the matmuls via constant-1 padded lanes."""
    D, H1 = params["w1"].shape
    H2 = params["w2"].shape[1]
    H1p, H2p = _round_up(H1, 128), _round_up(H2, 128)   # 256, 128
    assert H1 < H1p and H2 < H2p, "bias folding needs a free padded lane"
    one1 = H1p - 1      # h1 constant-1 lane
    one2 = H2p - 1      # h2 constant-1 lane

    w1 = jnp.zeros((D, H1p), jnp.bfloat16).at[:, :H1].set(
        params["w1"].astype(jnp.bfloat16))
    b1 = jnp.zeros((1, H1p), jnp.float32).at[:, :H1].set(params["b1"])
    b1 = b1.at[0, one1].set(1.0)                        # h1[:, one1] == 1 after ReLU

    w2 = jnp.zeros((H1p, H2p), jnp.bfloat16).at[:H1, :H2].set(
        params["w2"].astype(jnp.bfloat16))
    w2 = w2.at[one1, :H2].set(params["b2"][0].astype(jnp.bfloat16))   # fold b2
    w2 = w2.at[one1, one2].set(1.0)                     # h2[:, one2] == 1 after ReLU

    # Final layer stored as a sublane-aligned (16, H2p) row block; row 0 real.
    w3 = jnp.zeros((16, H2p), jnp.bfloat16).at[0, :H2].set(
        params["w3"][:, 0].astype(jnp.bfloat16))
    w3 = w3.at[0, one2].set(params["b3"][0, 0].astype(jnp.bfloat16))  # fold b3

    return dict(w1=w1, b1=b1, w2=w2, w3=w3)


def reference_forward(x, params):
    h = jnp.maximum(x @ params["w1"] + params["b1"], 0.0)
    h = jnp.maximum(h @ params["w2"] + params["b2"], 0.0)
    return jax.nn.sigmoid(h @ params["w3"] + params["b3"])


if __name__ == "__main__":
    key = jax.random.PRNGKey(0)
    input_space = 32
    params = init_params(key, input_space)
    kernel_params = prepare_params(params)

    # Small case (single partial tile) and a moderate case exercising the
    # multi-step grid + ragged tail path.
    for batch in (8, 1000):
        key, kx = jax.random.split(key)
        x = jax.random.normal(kx, (batch, input_space), dtype=jnp.float32)

        out = dnn_forward(x, kernel_params)
        out = jax.block_until_ready(out)

        ref = reference_forward(x, params)
        assert out.shape == (batch, 1)
        # bf16 matmuls / folded bf16 biases (f32 accumulation) vs. pure-f32 ref.
        assert jnp.allclose(out, ref, atol=2e-2, rtol=2e-2), \
            f"mismatch vs. JAX reference at batch={batch}"

    print("KERNEL_OK")
</pallas_src>

<mosaic_0001>
module attributes {stable_mosaic.version = 11 : i64} {
  func.func @dnn_kernel(%arg0: i32, %arg1: memref<128x32xf32, #tpu.memory_space<vmem>>, %arg2: memref<32x256xbf16, #tpu.memory_space<vmem>>, %arg3: memref<1x256xf32, #tpu.memory_space<vmem>>, %arg4: memref<256x128xbf16, #tpu.memory_space<vmem>>, %arg5: memref<16x128xbf16, #tpu.memory_space<vmem>>, %arg6: memref<1x128xf32, #tpu.memory_space<vmem>>) attributes {dimension_semantics = [#tpu.dimension_semantics<parallel>], iteration_bounds = array<i64: 1>, scalar_prefetch = 0 : i64, scratch_operands = 0 : i64, tpu.core_type = #tpu.core_type<tc>, window_params = [{transform_indices = @transform_0, window_bounds = array<i64: 128, 32>}, {pipeline_mode = #tpu.pipeline_mode<synchronous>, transform_indices = @transform_1, window_bounds = array<i64: 32, 256>}, {pipeline_mode = #tpu.pipeline_mode<synchronous>, transform_indices = @transform_2, window_bounds = array<i64: 1, 256>}, {pipeline_mode = #tpu.pipeline_mode<synchronous>, transform_indices = @transform_3, window_bounds = array<i64: 256, 128>}, {pipeline_mode = #tpu.pipeline_mode<synchronous>, transform_indices = @transform_4, window_bounds = array<i64: 16, 128>}, {transform_indices = @transform_5, window_bounds = array<i64: 1, 128>}]} {
    %c0 = arith.constant 0 : index
    %c0_0 = arith.constant 0 : index
    %0 = vector.load %arg1[%c0, %c0_0] : memref<128x32xf32, #tpu.memory_space<vmem>>, vector<128x32xf32>
    %1 = arith.truncf %0 : vector<128x32xf32> to vector<128x32xbf16>
    %c0_1 = arith.constant 0 : index
    %c0_2 = arith.constant 0 : index
    %2 = vector.load %arg2[%c0_1, %c0_2] : memref<32x256xbf16, #tpu.memory_space<vmem>>, vector<32x256xbf16>
    %cst = arith.constant dense<0.000000e+00> : vector<128x256xf32>
    %3 = tpu.matmul %1, %2, %cst {dimension_numbers = #tpu.dot_dimension_numbers<[1], [0], [0], [1], [0, 0, 1, 1], [], []>} : vector<128x32xbf16>, vector<32x256xbf16>, vector<128x256xf32> -> vector<128x256xf32>
    %c0_3 = arith.constant 0 : index
    %c0_4 = arith.constant 0 : index
    %4 = vector.load %arg3[%c0_3, %c0_4] : memref<1x256xf32, #tpu.memory_space<vmem>>, vector<1x256xf32>
    %5 = vector.broadcast %4 : vector<1x256xf32> to vector<128x256xf32>
    %6 = arith.addf %3, %5 : vector<128x256xf32>
    %cst_5 = arith.constant 0.000000e+00 : f32
    %7 = vector.broadcast %cst_5 : f32 to vector<128x256xf32>
    %8 = arith.maximumf %6, %7 : vector<128x256xf32>
    %9 = arith.truncf %8 : vector<128x256xf32> to vector<128x256xbf16>
    %c0_6 = arith.constant 0 : index
    %c0_7 = arith.constant 0 : index
    %10 = vector.load %arg4[%c0_6, %c0_7] : memref<256x128xbf16, #tpu.memory_space<vmem>>, vector<256x128xbf16>
    %cst_8 = arith.constant dense<0.000000e+00> : vector<128x128xf32>
    %11 = tpu.matmul %9, %10, %cst_8 {dimension_numbers = #tpu.dot_dimension_numbers<[1], [0], [0], [1], [0, 0, 1, 1], [], []>} : vector<128x256xbf16>, vector<256x128xbf16>, vector<128x128xf32> -> vector<128x128xf32>
    %cst_9 = arith.constant 0.000000e+00 : f32
    %12 = vector.broadcast %cst_9 : f32 to vector<128x128xf32>
    %13 = arith.maximumf %11, %12 : vector<128x128xf32>
    %14 = arith.truncf %13 : vector<128x128xf32> to vector<128x128xbf16>
    %c0_10 = arith.constant 0 : index
    %c0_11 = arith.constant 0 : index
    %15 = vector.load %arg5[%c0_10, %c0_11] : memref<16x128xbf16, #tpu.memory_space<vmem>>, vector<16x128xbf16>
    %cst_12 = arith.constant dense<0.000000e+00> : vector<16x128xf32>
    %16 = tpu.matmul %15, %14, %cst_12 {dimension_numbers = #tpu.dot_dimension_numbers<[1], [1], [0], [0], [0, 0, 1, 0], [], []>} : vector<16x128xbf16>, vector<128x128xbf16>, vector<16x128xf32> -> vector<16x128xf32>
    %17 = vector.extract_strided_slice %16 {offsets = [0, 0], sizes = [1, 128], strides = [1, 1]} : vector<16x128xf32> to vector<1x128xf32>
    %18 = arith.negf %17 : vector<1x128xf32>
    %19 = math.exp %18 : vector<1x128xf32>
    %cst_13 = arith.constant 1.000000e+00 : f32
    %20 = vector.broadcast %cst_13 : f32 to vector<1x128xf32>
    %21 = arith.addf %20, %19 : vector<1x128xf32>
    %22 = arith.divf %20, %21 : vector<1x128xf32>
    %c0_14 = arith.constant 0 : index
    %c0_15 = arith.constant 0 : index
    %23 = vector.load %arg6[%c0_14, %c0_15] : memref<1x128xf32, #tpu.memory_space<vmem>>, vector<1x128xf32>
    tpu.vector_store %arg6[%c0_14, %c0_15], %22 {strides = array<i32>} : memref<1x128xf32, #tpu.memory_space<vmem>>, vector<1x128xf32>,
    return
  }
  func.func @transform_0(%arg0: i32) -> (i32, i32) {
    %c0_i32 = arith.constant 0 : i32
    %c0_i32_0 = arith.constant 0 : i32
    return %arg0, %c0_i32 : i32, i32
  }
  func.func @transform_1(%arg0: i32) -> (i32, i32) {
    %c0_i32 = arith.constant 0 : i32
    %c0_i32_0 = arith.constant 0 : i32
    %c0_i32_1 = arith.constant 0 : i32
    return %c0_i32, %c0_i32_0 : i32, i32
  }
  func.func @transform_2(%arg0: i32) -> (i32, i32) {
    %c0_i32 = arith.constant 0 : i32
    %c0_i32_0 = arith.constant 0 : i32
    %c0_i32_1 = arith.constant 0 : i32
    return %c0_i32, %c0_i32_0 : i32, i32
  }
  func.func @transform_3(%arg0: i32) -> (i32, i32) {
    %c0_i32 = arith.constant 0 : i32
    %c0_i32_0 = arith.constant 0 : i32
    %c0_i32_1 = arith.constant 0 : i32
    return %c0_i32, %c0_i32_0 : i32, i32
  }
  func.func @transform_4(%arg0: i32) -> (i32, i32) {
    %c0_i32 = arith.constant 0 : i32
    %c0_i32_0 = arith.constant 0 : i32
    %c0_i32_1 = arith.constant 0 : i32
    return %c0_i32, %c0_i32_0 : i32, i32
  }
  func.func @transform_5(%arg0: i32) -> (i32, i32) {
    %c0_i32 = arith.constant 0 : i32
    %c0_i32_0 = arith.constant 0 : i32
    return %c0_i32, %arg0 : i32, i32
  }
}

</mosaic_0001>

<bundles_post_ra>
// kernel: tpu_custom_call.1
= control target key start
LH: loop header
LB: loop body
LE: loop exit
PB: predicated region body
PF: predicated region fallthrough
CT: control target
= control target key end

     0   :  { %10 = vsyncpa [#allocation3], 0  ;;  %s1034_s0 = inlined_call_operand.hbm [shape: f32[8,32], index: 0, kind: input, shape index: {}]   ;;  %s1035_s1 = inlined_call_operand.hbm [shape: bf16[32,256], index: 1, kind: input, shape index: {}]   ;;  %s1036_s2 = inlined_call_operand.hbm [shape: f32[1,256], index: 2, kind: input, shape index: {}]   ;;  %s1037_s3 = inlined_call_operand.hbm [shape: bf16[256,128], index: 3, kind: input, shape index: {}]   ;;  %s1038_s4 = inlined_call_operand.hbm [shape: bf16[16,128], index: 4, kind: input, shape index: {}]   ;;  %s1039_s5 = inlined_call_operand.hbm [shape: f32[1,8], index: 5, kind: output, shape index: {}]  }
   0x1   :  { %11 = vsyncpa [#allocation6], 0 }
   0x2   :  { %12 = vsyncpa [#allocation9], 0 }
   0x3   :  { %13 = vsyncpa [#allocation4], 0 }
   0x4   :  { %17 = vsyncadd [#allocation3], 1920  ;;  %s31_s20 = sshll.u32 %s1035_s1, 4  ;;  %s921_s21 = smov [#allocation5]   ;;  %s32_s20 = int_to_ptr.hbm [resolvable:$true] %s31_s20 }
   0x5   :  { %s33_s22 = sshll.u32 %s921_s21, 4  ;;  %s55_s25 = sshll.u32 %s1037_s3, 4  ;;  %s34_s22 = int_to_ptr.vmem [resolvable:$true] %s33_s22  ;;  %s56_s25 = int_to_ptr.hbm [resolvable:$true] %s55_s25 }
   0x6   :  { %s922_s26 = smov 128   ;;  %s923_s27 = smov 8  }
   0x7   :  { %39 = dma.hbm_to_vmem [thread:$0]  %s32_s20, 512, %s34_s22, [#allocation6], %s922_s26, %s922_s26, %s923_s27  }
   0x8   :  { %s924_s28 = smov [#allocation8]   ;;  %s925_s30 = smov 64  }
   0x9   :  { %s57_s29 = sshll.u32 %s924_s28, 4  ;;  %s926_s6 = smov 4   ;;  %s58_s29 = int_to_ptr.vmem [resolvable:$true] %s57_s29 }
   0xa   :  { %63 = dma.hbm_to_vmem [thread:$0]  %s56_s25, 2048, %s58_s29, [#allocation9], %s925_s30, %s925_s30, %s926_s6  }
   0xb   :  { %s18_s8 = sshll.u32 %s1034_s0, 4  ;;  %s927_s9 = smov [#allocation2]   ;;  %s19_s8 = int_to_ptr.hbm [resolvable:$true] %s18_s8 }
   0xc   :  { %s20_s10 = sshll.u32 %s927_s9, 4  ;;  %s45_s12 = sshll.u32 %s1036_s2, 4  ;;  %s21_s10 = int_to_ptr.vmem [resolvable:$true] %s20_s10  ;;  %s46_s12 = int_to_ptr.hbm [resolvable:$true] %s45_s12 }
   0xd   :  { %26 = dma.hbm_to_vmem [thread:$0]  %s19_s8, 128, %s21_s10, [#allocation3], %s922_s26, %s922_s26, %s923_s27  }
   0xe   :  { %s928_s13 = smov [#allocation7]   ;;  %s68_s17 = sshll.u32 %s1038_s4, 4  ;;  %s69_s17 = int_to_ptr.hbm [resolvable:$true] %s68_s17 }
   0xf   :  { %s47_s14 = sshll.u32 %s928_s13, 4  ;;  %s929_s0 = smov [#allocation10]   ;;  %s48_s14 = int_to_ptr.vmem [resolvable:$true] %s47_s14 }
  0x10   :  { %50 = dma.hbm_to_vmem [thread:$0]  %s46_s12, 32, %s48_s14, [#allocation6]  }
  0x11   :  { %s70_s18 = sshll.u32 %s929_s0, 4  ;;  %s71_s18 = int_to_ptr.vmem [resolvable:$true] %s70_s18 }
  0x12   :  { %76 = dma.hbm_to_vmem [thread:$0]  %s69_s17, 128, %s71_s18, [#allocation9], %s925_s30, %s925_s30, %s926_s6  }
  0x13   :  { %913 = dma.done.wait [#allocation3], 2048  }
  0x14   :  { %914 = vsyncadd [#allocation3], 4294965248 }
  0x15   :  { %915 = dma.done.wait [#allocation6], 544  }
  0x16   :  { %916 = vsyncadd [#allocation6], 4294966752 }
  0x17   :  { %917 = dma.done.wait [#allocation9], 2176  }
  0x18   :  { %918 = vsyncadd [#allocation9], 4294965120  ;;  %v643_v0 = vld [vmem:[#allocation5 + $0x10] sm:$0xf]  ;;  %v737_v1 = vld [vmem:[#allocation5 + $0x14] sm:$0xf0] }
  0x19   :  { %v736_v2 = vld [vmem:[#allocation5 + $0x14] sm:$0xf]  ;;  %v644_v3 = vor.u32 %v737_v1, %v643_v0  ;;  %v645_v4 = vld [vmem:[#allocation5 + $0x18] sm:$0xf0]  ;;  %v635_v5 = vld [vmem:[#allocation5] sm:$0xf] }
  0x1a   :  { %v735_v6 = vld [vmem:[#allocation5 + $0x4] sm:$0xf0]  ;;  %v648_v7 = vor.u32 %v736_v2, %v645_v4  ;;  %v734_v8 = vld [vmem:[#allocation5 + $0x4] sm:$0xf]  ;;  %v637_v9 = vld [vmem:[#allocation5 + $0x8] sm:$0xf0] }
  0x1b   :  { %183 = vmatpush.bf16.msra.mxu0 %v644_v3  ;;  %v636_v10 = vor.u32 %v735_v6, %v635_v5  ;;  %v98_v11 = vld [vmem:[#allocation2] sm:$0xff]  ;;  %v99_v12 = vld [vmem:[#allocation2 + $0x8] sm:$0xff]  ;;  %v640_v13 = vor.u32 %v734_v8, %v637_v9  ;;  %vm152_vm0 = vcmask 261120   ;;  %v100_v15 = vld [vmem:[#allocation2 + $0x10] sm:$0xff]  ;;  %s930_s2 = smov [#allocation11]   ;;  %s621_s21 = sshll.u32 %s1039_s5, 4  ;;  %s622_s21 = int_to_ptr.hbm [resolvable:$true] %s621_s21 }
  0x1c   :  { %232 = vmatpush.bf16.msra.mxu1 %v648_v7  ;;  %v114_v14 = vpack.c.bf16 %v99_v12, %v98_v11  ;;  %v101_v16 = vld [vmem:[#allocation2 + $0x18] sm:$0xff]  ;;  %v102_v18 = vld [vmem:[#allocation2 + $0x20] sm:$0xff]  ;;  %v103_v19 = vld [vmem:[#allocation2 + $0x28] sm:$0xff]  ;;  %s619_s4 = sshll.u32 %s930_s2, 4  ;;  %s620_s4 = int_to_ptr.vmem [resolvable:$true] %s619_s4 }
  0x1d   :  { %v115_v17 = vpack.c.bf16 %v101_v16, %v100_v15  ;;  %v116_v20 = vpack.c.bf16 %v103_v19, %v102_v18  ;;  %v104_v21 = vld [vmem:[#allocation2 + $0x30] sm:$0xff]  ;;  %v105_v22 = vld [vmem:[#allocation2 + $0x38] sm:$0xff]  ;;  %v106_v24 = vld [vmem:[#allocation2 + $0x40] sm:$0xff] }
  0x1e   :  { %v117_v23 = vpack.c.bf16 %v105_v22, %v104_v21  ;;  %v107_v25 = vld [vmem:[#allocation2 + $0x48] sm:$0xff]  ;;  %v745_v27 = vld [vmem:[#allocation8 + $0x38] sm:$0xff]  ;;  %v108_v29 = vld [vmem:[#allocation2 + $0x50] sm:$0xff] }
  0x1f   :  { %184 = vmatpush.bf16.msra.mxu0 %v636_v10  ;;  %v118_v26 = vpack.c.bf16 %v107_v25, %v106_v24  ;;  %v753_v28 = vld [vmem:[#allocation8 + $0x78] sm:$0xff]  ;;  %451 = vmatpush.bf16.msra.mxu2 %v745_v27  ;;  %v744_v32 = vld [vmem:[#allocation8 + $0x30] sm:$0xff]  ;;  %v743_v34 = vld [vmem:[#allocation8 + $0x28] sm:$0xff] }
  0x20   :  { %233 = vmatpush.bf16.msra.mxu1 %v640_v13  ;;  %500 = vmatpush.bf16.msra.mxu3 %v753_v28  ;;  %v109_v30 = vld [vmem:[#allocation2 + $0x58] sm:$0xff]  ;;  %v751_v35 = vld [vmem:[#allocation8 + $0x68] sm:$0xff]  ;;  %v742_v36 = vld [vmem:[#allocation8 + $0x20] sm:$0xff] }
  0x21   :  { %v119_v31 = vpack.c.bf16 %v109_v30, %v108_v29  ;;  %v752_v33 = vld [vmem:[#allocation8 + $0x70] sm:$0xff]  ;;  %v750_v37 = vld [vmem:[#allocation8 + $0x60] sm:$0xff]  ;;  %v741_v41 = vld [vmem:[#allocation8 + $0x18] sm:$0xff] }
  0x22   :  { %649 = vmatmul.msk.bf16.vlgmr.msra.gmra.mxu0 %vm152_vm0, %v114_v14  ;;  %v110_v38 = vld [vmem:[#allocation2 + $0x60] sm:$0xff]  ;;  %v111_v39 = vld [vmem:[#allocation2 + $0x68] sm:$0xff]  ;;  %v740_v43 = vld [vmem:[#allocation8 + $0x10] sm:$0xff] }
  0x23   :  { %657 = vmatmul.msk.bf16.vlgmr.msra.gmra.mxu1 %vm152_vm0, %v114_v14  ;;  %452 = vmatpush.bf16.msra.mxu2 %v744_v32  ;;  %v120_v40 = vpack.c.bf16 %v111_v39, %v110_v38  ;;  %v749_v42 = vld [vmem:[#allocation8 + $0x58] sm:$0xff]  ;;  %v748_v44 = vld [vmem:[#allocation8 + $0x50] sm:$0xff]  ;;  %v739_v45 = vld [vmem:[#allocation8 + $0x8] sm:$0xff] }
  0x24   :  { %501 = vmatpush.bf16.msra.mxu3 %v752_v33  ;;  %v747_v46 = vld [vmem:[#allocation8 + $0x48] sm:$0xff]  ;;  %v738_v47 = vld [vmem:[#allocation8] sm:$0xff]  ;;  %v113_v50 = vld [vmem:[#allocation2 + $0x78] sm:$0xff] }
  0x25   :  { %v746_v48 = vld [vmem:[#allocation8 + $0x40] sm:$0xff]  ;;  %v112_v49 = vld [vmem:[#allocation2 + $0x70] sm:$0xff]  ;;  %v126_v52 = vld [vmem:[#allocation7] sm:$0x3] }
  0x26   :  { %v121_v51 = vpack.c.bf16 %v113_v50, %v112_v49  ;;  %v992_v55 = vperm.slane %v126_v52, 0  ;;  %v994_v56 = vperm.slane %v126_v52, 1 }
  0x27   :  { %453 = vmatpush.bf16.msra.mxu2 %v743_v34 }
  0x28   :  { %502 = vmatpush.bf16.msra.mxu3 %v751_v35 }
  0x2b   :  { %454 = vmatpush.bf16.msra.mxu2 %v742_v36 }
  0x2c   :  { %503 = vmatpush.bf16.msra.mxu3 %v750_v37 }
  0x2f   :  { %455 = vmatpush.bf16.msra.mxu2 %v741_v41 }
  0x30   :  { %504 = vmatpush.bf16.msra.mxu3 %v749_v42 }
  0x32   :  { %650 = vmatmul.msk.bf16.gmra.mxu0 %vm152_vm0, %v115_v17 }
  0x33   :  { %658 = vmatmul.msk.bf16.gmra.mxu1 %vm152_vm0, %v115_v17  ;;  %456 = vmatpush.bf16.msra.mxu2 %v740_v43 }
  0x34   :  { %505 = vmatpush.bf16.msra.mxu3 %v748_v44 }
  0x37   :  { %457 = vmatpush.bf16.msra.mxu2 %v739_v45 }
  0x38   :  { %506 = vmatpush.bf16.msra.mxu3 %v747_v46 }
  0x3b   :  { %458 = vmatpush.bf16.msra.mxu2 %v738_v47 }
  0x3c   :  { %507 = vmatpush.bf16.msra.mxu3 %v746_v48 }
  0x42   :  { %651 = vmatmul.msk.bf16.gmra.mxu0 %vm152_vm0, %v116_v20 }
  0x43   :  { %659 = vmatmul.msk.bf16.gmra.mxu1 %vm152_vm0, %v116_v20 }
  0x52   :  { %652 = vmatmul.msk.bf16.gmra.mxu0 %vm152_vm0, %v117_v23 }
  0x53   :  { %660 = vmatmul.msk.bf16.gmra.mxu1 %vm152_vm0, %v117_v23 }
  0x62   :  { %653 = vmatmul.msk.bf16.gmra.mxu0 %vm152_vm0, %v118_v26 }
  0x63   :  { %661 = vmatmul.msk.bf16.gmra.mxu1 %vm152_vm0, %v118_v26 }
  0x72   :  { %654 = vmatmul.msk.bf16.gmra.mxu0 %vm152_vm0, %v119_v31 }
  0x73   :  { %662 = vmatmul.msk.bf16.gmra.mxu1 %vm152_vm0, %v119_v31 }
  0x82   :  { %655 = vmatmul.msk.bf16.gmra.mxu0 %vm152_vm0, %v120_v40 }
  0x83   :  { %663 = vmatmul.msk.bf16.gmra.mxu1 %vm152_vm0, %v120_v40 }
  0x92   :  { %656 = vmatmul.msk.bf16.gmra.mxu0 %vm152_vm0, %v121_v51 }
  0x93   :  { %664 = vmatmul.msk.bf16.gmra.mxu1 %vm152_vm0, %v121_v51 }
  0x9f   :  { %v186_v53 = vpop.f32.mrf.mxu0 }
  0xa0   :  { %v235_v54 = vpop.f32.mrf.mxu1  ;;  %v187_v57 = vadd.f32 %v186_v53, %v992_v55 }
  0xa1   :  { %v236_v58 = vadd.f32 %v235_v54, %v994_v56 }
  0xa2   :  { %v275_v63 = vmax.f32 %v187_v57, 0.0 }
  0xa3   :  { %v276_v1 = vmax.f32 %v236_v58, 0.0 }
  0xa7   :  { %v188_v59 = vpop.f32.mrf.mxu0 }
  0xa8   :  { %v189_v60 = vadd.f32 %v188_v59, %v992_v55  ;;  %v237_v61 = vpop.f32.mrf.mxu1 }
  0xa9   :  { %v238_v62 = vadd.f32 %v237_v61, %v994_v56 }
  0xaa   :  { %v277_v0 = vmax.f32 %v189_v60, 0.0 }
  0xab   :  { %v278_v2 = vmax.f32 %v238_v62, 0.0 }
  0xac   :  { %v307_v3 = vpack.c.bf16 %v277_v0, %v275_v63 }
  0xad   :  { %v308_v4 = vpack.c.bf16 %v278_v2, %v276_v1 }
  0xae   :  { %459 = vmatmul.bf16.vlgmr.msra.gmra.mxu2 %v307_v3 }
  0xaf   :  { %508 = vmatmul.bf16.vlgmr.msra.gmra.mxu3 %v308_v4  ;;  %v191_v5 = vpop.f32.mrf.mxu0 }
  0xb0   :  { %v240_v6 = vpop.f32.mrf.mxu1  ;;  %v192_v7 = vadd.f32 %v191_v5, %v992_v55 }
  0xb1   :  { %v241_v8 = vadd.f32 %v240_v6, %v994_v56 }
  0xb2   :  { %v279_v13 = vmax.f32 %v192_v7, 0.0 }
  0xb3   :  { %v280_v15 = vmax.f32 %v241_v8, 0.0 }
  0xb7   :  { %v193_v9 = vpop.f32.mrf.mxu0 }
  0xb8   :  { %v194_v10 = vadd.f32 %v193_v9, %v992_v55  ;;  %v242_v11 = vpop.f32.mrf.mxu1 }
  0xb9   :  { %v243_v12 = vadd.f32 %v242_v11, %v994_v56 }
  0xba   :  { %v281_v14 = vmax.f32 %v194_v10, 0.0 }
  0xbb   :  { %v282_v16 = vmax.f32 %v243_v12, 0.0 }
  0xbc   :  { %v309_v17 = vpack.c.bf16 %v281_v14, %v279_v13 }
  0xbd   :  { %v310_v18 = vpack.c.bf16 %v282_v16, %v280_v15 }
  0xbe   :  { %464 = vmatmul.bf16.gmra.mxu2 %v309_v17 }
  0xbf   :  { %513 = vmatmul.bf16.gmra.mxu3 %v310_v18  ;;  %v196_v19 = vpop.f32.mrf.mxu0 }
  0xc0   :  { %v245_v20 = vpop.f32.mrf.mxu1  ;;  %v197_v21 = vadd.f32 %v196_v19, %v992_v55 }
  0xc1   :  { %v246_v22 = vadd.f32 %v245_v20, %v994_v56 }
  0xc2   :  { %v283_v27 = vmax.f32 %v197_v21, 0.0 }
  0xc3   :  { %v284_v29 = vmax.f32 %v246_v22, 0.0 }
  0xc7   :  { %v198_v23 = vpop.f32.mrf.mxu0 }
  0xc8   :  { %v199_v24 = vadd.f32 %v198_v23, %v992_v55  ;;  %v247_v25 = vpop.f32.mrf.mxu1 }
  0xc9   :  { %v248_v26 = vadd.f32 %v247_v25, %v994_v56 }
  0xca   :  { %v285_v28 = vmax.f32 %v199_v24, 0.0 }
  0xcb   :  { %v286_v30 = vmax.f32 %v248_v26, 0.0 }
  0xcc   :  { %v311_v31 = vpack.c.bf16 %v285_v28, %v283_v27 }
  0xcd   :  { %v312_v32 = vpack.c.bf16 %v286_v30, %v284_v29 }
  0xce   :  { %469 = vmatmul.bf16.gmra.mxu2 %v311_v31 }
  0xcf   :  { %518 = vmatmul.bf16.gmra.mxu3 %v312_v32  ;;  %v201_v33 = vpop.f32.mrf.mxu0 }
  0xd0   :  { %v250_v34 = vpop.f32.mrf.mxu1  ;;  %v202_v35 = vadd.f32 %v201_v33, %v992_v55 }
  0xd1   :  { %v251_v36 = vadd.f32 %v250_v34, %v994_v56 }
  0xd2   :  { %v287_v41 = vmax.f32 %v202_v35, 0.0 }
  0xd3   :  { %v288_v43 = vmax.f32 %v251_v36, 0.0 }
  0xd7   :  { %v203_v37 = vpop.f32.mrf.mxu0 }
  0xd8   :  { %v204_v38 = vadd.f32 %v203_v37, %v992_v55  ;;  %v252_v39 = vpop.f32.mrf.mxu1 }
  0xd9   :  { %v253_v40 = vadd.f32 %v252_v39, %v994_v56 }
  0xda   :  { %v289_v42 = vmax.f32 %v204_v38, 0.0 }
  0xdb   :  { %v290_v44 = vmax.f32 %v253_v40, 0.0 }
  0xdc   :  { %v313_v45 = vpack.c.bf16 %v289_v42, %v287_v41 }
  0xdd   :  { %v314_v46 = vpack.c.bf16 %v290_v44, %v288_v43 }
  0xde   :  { %474 = vmatmul.bf16.gmra.mxu2 %v313_v45 }
  0xdf   :  { %523 = vmatmul.bf16.gmra.mxu3 %v314_v46  ;;  %v206_v47 = vpop.f32.mrf.mxu0 }
  0xe0   :  { %v255_v48 = vpop.f32.mrf.mxu1  ;;  %v207_v49 = vadd.f32 %v206_v47, %v992_v55 }
  0xe1   :  { %v256_v50 = vadd.f32 %v255_v48, %v994_v56 }
  0xe2   :  { %v291_v57 = vmax.f32 %v207_v49, 0.0 }
  0xe3   :  { %v292_v59 = vmax.f32 %v256_v50, 0.0 }
  0xe7   :  { %v208_v51 = vpop.f32.mrf.mxu0 }
  0xe8   :  { %v209_v52 = vadd.f32 %v208_v51, %v992_v55  ;;  %v257_v53 = vpop.f32.mrf.mxu1 }
  0xe9   :  { %v258_v54 = vadd.f32 %v257_v53, %v994_v56 }
  0xea   :  { %v293_v58 = vmax.f32 %v209_v52, 0.0 }
  0xeb   :  { %v294_v60 = vmax.f32 %v258_v54, 0.0 }
  0xec   :  { %v315_v61 = vpack.c.bf16 %v293_v58, %v291_v57 }
  0xed   :  { %v316_v62 = vpack.c.bf16 %v294_v60, %v292_v59 }
  0xee   :  { %479 = vmatmul.bf16.gmra.mxu2 %v315_v61 }
  0xef   :  { %528 = vmatmul.bf16.gmra.mxu3 %v316_v62  ;;  %v211_v63 = vpop.f32.mrf.mxu0 }
  0xf0   :  { %v260_v0 = vpop.f32.mrf.mxu1  ;;  %v212_v1 = vadd.f32 %v211_v63, %v992_v55 }
  0xf1   :  { %v261_v2 = vadd.f32 %v260_v0, %v994_v56 }
  0xf2   :  { %v295_v7 = vmax.f32 %v212_v1, 0.0 }
  0xf3   :  { %v296_v9 = vmax.f32 %v261_v2, 0.0 }
  0xf7   :  { %v213_v3 = vpop.f32.mrf.mxu0 }
  0xf8   :  { %v214_v4 = vadd.f32 %v213_v3, %v992_v55  ;;  %v262_v5 = vpop.f32.mrf.mxu1 }
  0xf9   :  { %v263_v6 = vadd.f32 %v262_v5, %v994_v56 }
  0xfa   :  { %v297_v8 = vmax.f32 %v214_v4, 0.0 }
  0xfb   :  { %v298_v10 = vmax.f32 %v263_v6, 0.0 }
  0xfc   :  { %v317_v11 = vpack.c.bf16 %v297_v8, %v295_v7 }
  0xfd   :  { %v318_v12 = vpack.c.bf16 %v298_v10, %v296_v9 }
  0xfe   :  { %484 = vmatmul.bf16.gmra.mxu2 %v317_v11 }
  0xff   :  { %533 = vmatmul.bf16.gmra.mxu3 %v318_v12  ;;  %v216_v13 = vpop.f32.mrf.mxu0 }
 0x100   :  { %v265_v14 = vpop.f32.mrf.mxu1  ;;  %v217_v15 = vadd.f32 %v216_v13, %v992_v55 }
 0x101   :  { %v266_v16 = vadd.f32 %v265_v14, %v994_v56 }
 0x102   :  { %v299_v21 = vmax.f32 %v217_v15, 0.0 }
 0x103   :  { %v300_v23 = vmax.f32 %v266_v16, 0.0 }
 0x107   :  { %v218_v17 = vpop.f32.mrf.mxu0 }
 0x108   :  { %v219_v18 = vadd.f32 %v218_v17, %v992_v55  ;;  %v267_v19 = vpop.f32.mrf.mxu1 }
 0x109   :  { %v268_v20 = vadd.f32 %v267_v19, %v994_v56 }
 0x10a   :  { %v301_v22 = vmax.f32 %v219_v18, 0.0 }
 0x10b   :  { %v302_v24 = vmax.f32 %v268_v20, 0.0 }
 0x10c   :  { %v319_v25 = vpack.c.bf16 %v301_v22, %v299_v21 }
 0x10d   :  { %v320_v26 = vpack.c.bf16 %v302_v24, %v300_v23 }
 0x10e   :  { %489 = vmatmul.bf16.gmra.mxu2 %v319_v25 }
 0x10f   :  { %538 = vmatmul.bf16.gmra.mxu3 %v320_v26  ;;  %v221_v27 = vpop.f32.mrf.mxu0 }
 0x110   :  { %v270_v28 = vpop.f32.mrf.mxu1  ;;  %v222_v29 = vadd.f32 %v221_v27, %v992_v55 }
 0x111   :  { %v271_v30 = vadd.f32 %v270_v28, %v994_v56 }
 0x112   :  { %v303_v35 = vmax.f32 %v222_v29, 0.0 }
 0x113   :  { %v304_v37 = vmax.f32 %v271_v30, 0.0 }
 0x117   :  { %v223_v31 = vpop.f32.mrf.mxu0 }
 0x118   :  { %v224_v32 = vadd.f32 %v223_v31, %v992_v55  ;;  %v272_v33 = vpop.f32.mrf.mxu1 }
 0x119   :  { %v273_v34 = vadd.f32 %v272_v33, %v994_v56 }
 0x11a   :  { %v305_v36 = vmax.f32 %v224_v32, 0.0 }
 0x11b   :  { %v306_v38 = vmax.f32 %v273_v34, 0.0 }
 0x11c   :  { %v321_v39 = vpack.c.bf16 %v305_v36, %v303_v35 }
 0x11d   :  { %v322_v40 = vpack.c.bf16 %v306_v38, %v304_v37 }
 0x11e   :  { %494 = vmatmul.bf16.gmra.mxu2 %v321_v39 }
 0x11f   :  { %543 = vmatmul.bf16.gmra.mxu3 %v322_v40 }
 0x131   :  { %v460_v41 = vpop.f32.mrf.mxu2 }
 0x132   :  { %v509_v42 = vpop.f32.mrf.mxu3 }
 0x133   :  { %v510_v43 = vadd.f32 %v509_v42, %v460_v41 }
 0x135   :  { %v549_v47 = vmax.f32 %v510_v43, 0.0 }
 0x139   :  { %v462_v44 = vpop.f32.mrf.mxu2 }
 0x13a   :  { %v511_v45 = vpop.f32.mrf.mxu3 }
 0x13b   :  { %v512_v46 = vadd.f32 %v511_v45, %v462_v44 }
 0x13d   :  { %v550_v48 = vmax.f32 %v512_v46, 0.0 }
 0x13f   :  { %v1028_v55 = vpack.c.bf16 %v550_v48, %v549_v47 }
 0x141   :  { %v465_v49 = vpop.f32.mrf.mxu2 }
 0x142   :  { %v514_v56 = vpop.f32.mrf.mxu3 }
 0x143   :  { %v515_v50 = vadd.f32 %v514_v56, %v465_v49  ;;  %v754_v49 = vld [vmem:[#allocation10] sm:$0xff] }
 0x145   :  { %v551_v54 = vmax.f32 %v515_v50, 0.0 }
 0x149   :  { %v467_v51 = vpop.f32.mrf.mxu2 }
 0x14a   :  { %v516_v52 = vpop.f32.mrf.mxu3 }
 0x14b   :  { %v517_v53 = vadd.f32 %v516_v52, %v467_v51 }
 0x14d   :  { %v552_v57 = vmax.f32 %v517_v53, 0.0 }
 0x14f   :  { %v566_v58 = vpack.c.bf16 %v552_v57, %v551_v54 }
 0x151   :  { %v470_v59 = vpop.f32.mrf.mxu2 }
 0x152   :  { %v519_v60 = vpop.f32.mrf.mxu3 }
 0x153   :  { %v520_v61 = vadd.f32 %v519_v60, %v470_v59 }
 0x155   :  { %v553_v1 = vmax.f32 %v520_v61, 0.0 }
 0x159   :  { %v472_v62 = vpop.f32.mrf.mxu2 }
 0x15a   :  { %v521_v63 = vpop.f32.mrf.mxu3 }
 0x15b   :  { %v522_v0 = vadd.f32 %v521_v63, %v472_v62 }
 0x15d   :  { %v554_v2 = vmax.f32 %v522_v0, 0.0 }
 0x15f   :  { %v567_v3 = vpack.c.bf16 %v554_v2, %v553_v1 }
 0x161   :  { %v475_v4 = vpop.f32.mrf.mxu2 }
 0x162   :  { %v524_v5 = vpop.f32.mrf.mxu3 }
 0x163   :  { %v525_v6 = vadd.f32 %v524_v5, %v475_v4 }
 0x165   :  { %v555_v10 = vmax.f32 %v525_v6, 0.0 }
 0x169   :  { %v477_v7 = vpop.f32.mrf.mxu2 }
 0x16a   :  { %v526_v8 = vpop.f32.mrf.mxu3 }
 0x16b   :  { %v527_v9 = vadd.f32 %v526_v8, %v477_v7 }
 0x16d   :  { %v556_v11 = vmax.f32 %v527_v9, 0.0 }
 0x16f   :  { %v568_v12 = vpack.c.bf16 %v556_v11, %v555_v10 }
 0x171   :  { %v480_v13 = vpop.f32.mrf.mxu2 }
 0x172   :  { %v529_v14 = vpop.f32.mrf.mxu3 }
 0x173   :  { %v530_v15 = vadd.f32 %v529_v14, %v480_v13 }
 0x175   :  { %v557_v19 = vmax.f32 %v530_v15, 0.0 }
 0x179   :  { %v482_v16 = vpop.f32.mrf.mxu2 }
 0x17a   :  { %v531_v17 = vpop.f32.mrf.mxu3 }
 0x17b   :  { %v532_v18 = vadd.f32 %v531_v17, %v482_v16 }
 0x17d   :  { %v558_v20 = vmax.f32 %v532_v18, 0.0 }
 0x17f   :  { %v569_v21 = vpack.c.bf16 %v558_v20, %v557_v19 }
 0x181   :  { %v485_v22 = vpop.f32.mrf.mxu2 }
 0x182   :  { %v534_v23 = vpop.f32.mrf.mxu3 }
 0x183   :  { %v535_v45 = vadd.f32 %v534_v23, %v485_v22 }
 0x185   :  { %v559_v47 = vmax.f32 %v535_v45, 0.0 }
 0x189   :  { %v487_v24 = vpop.f32.mrf.mxu2 }
 0x18a   :  { %v536_v25 = vpop.f32.mrf.mxu3 }
 0x18b   :  { %v537_v43 = vadd.f32 %v536_v25, %v487_v24 }
 0x18d   :  { %v560_v46 = vmax.f32 %v537_v43, 0.0 }
 0x18f   :  { %v570_v48 = vpack.c.bf16 %v560_v46, %v559_v47 }
 0x191   :  { %v490_v26 = vpop.f32.mrf.mxu2 }
 0x192   :  { %v539_v27 = vpop.f32.mrf.mxu3 }
 0x193   :  { %v540_v40 = vadd.f32 %v539_v27, %v490_v26 }
 0x195   :  { %v561_v42 = vmax.f32 %v540_v40, 0.0 }
 0x199   :  { %v492_v28 = vpop.f32.mrf.mxu2 }
 0x19a   :  { %v541_v29 = vpop.f32.mrf.mxu3 }
 0x19b   :  { %v542_v38 = vadd.f32 %v541_v29, %v492_v28 }
 0x19d   :  { %v562_v41 = vmax.f32 %v542_v38, 0.0 }
 0x19f   :  { %v571_v44 = vpack.c.bf16 %v562_v41, %v561_v42 }
 0x1a1   :  { %v495_v30 = vpop.f32.mrf.mxu2 }
 0x1a2   :  { %v544_v31 = vpop.f32.mrf.mxu3 }
 0x1a3   :  { %v545_v32 = vadd.f32 %v544_v31, %v495_v30 }
 0x1a5   :  { %v563_v36 = vmax.f32 %v545_v32, 0.0 }
 0x1a9   :  { %v497_v33 = vpop.f32.mrf.mxu2 }
 0x1aa   :  { %v546_v34 = vpop.f32.mrf.mxu3 }
 0x1ab   :  { %v547_v35 = vadd.f32 %v546_v34, %v497_v33 }
 0x1ad   :  { %v564_v37 = vmax.f32 %v547_v35, 0.0 }
 0x1af   :  { %v572_v39 = vpack.c.bf16 %v564_v37, %v563_v36 }
 0x1b1   :  { %581 = vmatpush.bf16.xpose.msrb.mxu0 %v572_v39 }
 0x1b9   :  { %582 = vmatpush.bf16.xpose.msrb.mxu0 %v571_v44 }
 0x1c1   :  { %583 = vmatpush.bf16.xpose.msrb.mxu0 %v570_v48 }
 0x1c9   :  { %584 = vmatpush.bf16.xpose.msrb.mxu0 %v569_v21 }
 0x1d1   :  { %585 = vmatpush.bf16.xpose.msrb.mxu0 %v568_v12 }
 0x1d9   :  { %586 = vmatpush.bf16.xpose.msrb.mxu0 %v567_v3 }
 0x1e1   :  { %587 = vmatpush.bf16.xpose.msrb.mxu0 %v566_v58 }
 0x1e9   :  { %588 = vmatpush.bf16.xpose.msrb.mxu0 %v1028_v55 }
 0x1f0   :  { %589 = vmatmul.bf16.vlgmr.msrb.gmra.mxu0 %v754_v49 }
 0x26d   :  { %v590_v56 = vpop.f32.mrf.mxu0 }
 0x26e   :  { %v733_v50 = vmul.f32 -1.442695, %v590_v56 }
 0x270   :  { %765 = vpow2.f32 %v733_v50 }
 0x275   :  { %v592_v51 = vpop.f32.mrf.mxu0 }
 0x276   :  { %v766_v52 = vpop.eup %765 }
 0x277   :  { %v597_v53 = vadd.f32 1.0, %v766_v52 }
 0x279   :  { %767 = vrcp.f32 %v597_v53  ;;  %v609_v60 = vand.u32 2147483648, %v597_v53  ;;  %v607_v62 = vand.u32 2147483647, %v597_v53  ;;  %vm603_vm2 = vweird.f32 %v597_v53 }
 0x27b   :  { %v610_v58 = vor.u32 1.1754944e-38, %v609_v60  ;;  %vm608_vm4 = vcmp.eq.f32.partialorder %v607_v62, 8.507059e+37 }
 0x27f   :  { %v768_v54 = vpop.eup %767 }
 0x280   :  { %v599_v57 = vmul.f32 %v768_v54, %v597_v53  ;;  %vm604_vm1 = vweird.f32 %v768_v54 }
 0x281   :  { %vm605_vm3 = vmor %vm603_vm2, %vm604_vm1 }
 0x282   :  { %v600_v59 = vsub.f32 1.0, %v599_v57 }
 0x284   :  { %v601_v61 = vmul.f32 %v768_v54, %v600_v59 }
 0x286   :  { %v602_v55 = vadd.f32 %v768_v54, %v601_v61 }
 0x288   :  { %v606_v63 = vsel %vm605_vm3, %v768_v54, %v602_v55 }
 0x289   :  { %v611_v0 = vsel %vm608_vm4, %v610_v58, %v606_v63 }
 0x28a   :  { %613 = vst [vmem:[#allocation11] sm:$0x1] %v611_v0 }
 0x28b   :  { %624 = dma.vmem_to_hbm [thread:$0]  %s620_s4, 16, %s622_s21, [#allocation4]  }
 0x28c   :  { %919 = dma.done.wait [#allocation4], 16  }
 0x28d   :  { %920 = vsyncadd [#allocation4], 4294967280 }
 0x28e   :  { %629 = vsyncpa [#allocation3], 1 }
 0x28f   :  { %630 = vsyncpa [#allocation6], 1 }
 0x290   :  { %631 = vsyncpa [#allocation9], 1 }
 0x291   :  { %632 = vsyncpa [#allocation4], 1 }

</bundles_post_ra>
